<compile_context>
chip_gen: v5e
topology: v5e:2x2
jax: 0.10.0
libtpu: 0.0.40
codegen_flags: <defaults>
</compile_context>

<pallas_src>
import math
import functools

import jax
import jax.numpy as jnp
from jax import lax
from jax.experimental import pallas as pl
from jax.experimental.pallas import tpu as pltpu

_MIB = 1024 * 1024


def _make_pe_table(max_len: int, d_model: int) -> jnp.ndarray:
    """Plain-JAX construction of the sinusoidal PE buffer, shape (max_len, d_model)."""
    position = jnp.arange(0, max_len, dtype=jnp.float32)[:, None]
    div_term = jnp.exp(
        jnp.arange(0, d_model, 2, dtype=jnp.float32) * -(math.log(10000.0) / d_model))
    angles = position * div_term
    pe = jnp.zeros((max_len, d_model), dtype=jnp.float32)
    pe = pe.at[:, 0::2].set(jnp.sin(angles))
    pe = pe.at[:, 1::2].set(jnp.cos(angles))
    return pe


def _pe_dropout_kernel(seed_ref, x_ref, pe_ref, o_ref, *,
                       keep_threshold_24: int, inv_keep_prob: float,
                       bt: int, ts: int, s2: int, e2: int, compute_dtype):
    # seed_ref: SMEM scalar-prefetch, shape (1,), int32
    # x_ref / o_ref: (bt, ts, E2) blocks;  pe_ref: (ts, E2), resident across the batch loop.
    si = pl.program_id(0)            # sequence-chunk index (outer grid axis)
    bi = pl.program_id(1)            # batch-chunk index (inner grid axis)

    y = x_ref[...].astype(compute_dtype) + pe_ref[...].astype(compute_dtype)[None, :, :]

    if keep_threshold_24 < (1 << 24):                 # dropout_p > 0 (static branch)
        # Counter = global flat element index (+ seed), hashed with 1 mul + 2 xorshifts.
        # Block-start offset is folded into one scalar on the scalar unit.
        base = (bi * (bt * s2) + si * ts) * e2        # scalar int32 (wraps mod 2^32)
        i_s = lax.broadcasted_iota(jnp.int32, (bt, ts, e2), 1)
        i_e = lax.broadcasted_iota(jnp.int32, (bt, ts, e2), 2)
        if bt == 1:
            local = i_s * e2 + i_e
        else:
            i_b = lax.broadcasted_iota(jnp.int32, (bt, ts, e2), 0)
            local = (i_b * s2 + i_s) * e2 + i_e
        ctr = (local + base).astype(jnp.uint32)
        h = ctr + seed_ref[0].astype(jnp.uint32) * jnp.uint32(0x9E3779B9)
        h = h ^ (h >> 16)
        h = h * jnp.uint32(0x7FEB352D)                # single 32-bit vector multiply
        h = h ^ (h >> 15)
        # Integer threshold compare on the low 24 bits: keep w.p. keep_prob.
        keep = (h & jnp.uint32(0x00FFFFFF)).astype(jnp.int32) < keep_threshold_24
        y = jnp.where(keep, y * jnp.asarray(inv_keep_prob, compute_dtype), 0.0)

    o_ref[...] = y.astype(o_ref.dtype)


def _lane_fold(S: int, E: int) -> int:
    """Fold factor k so that k*E is a multiple of 128 (lane-dense stores), if S allows."""
    if E % 128 == 0:
        return 1
    k = 128 // math.gcd(E, 128)
    if k > 1 and S % k == 0:
        return k
    return 1


def _pick_tiles(B: int, S2: int, E2: int, x_itemsize: int, pe_itemsize: int,
                budget_bytes: int, with_dropout: bool):
    """Pick (seq_tile, batch_tile) so double-buffered blocks + mask temps fit the budget."""
    sublane = max(8, 32 // x_itemsize)            # 8 f32, 16 bf16, 32 int8/fp8
    n_tmp = 6 if with_dropout else 1              # tile-sized 32-bit temporaries (mask math)
    row_x = E2 * (4 * x_itemsize + 4 * n_tmp)     # x + out double-buffered + temporaries
    row_pe = E2 * 2 * pe_itemsize                 # pe double-buffered
    max_rows = max(1, budget_bytes // (row_x + row_pe))
    if max_rows >= S2:
        ts = S2
    else:
        ts = min(S2, max(sublane, (max_rows // sublane) * sublane))
    bt = 1
    if ts == S2 and B > 1:                        # whole (folded) seq fits -> grow along batch
        slab = S2 * row_x
        bt = int(max(1, min(B, (budget_bytes - S2 * row_pe) // max(slab, 1))))
        while B % bt:                             # keep batch blocks non-ragged
            bt -= 1
    # v7x megacore: make sure there are >= 2 grid steps to shard across the 2 TensorCores.
    if pl.cdiv(S2, ts) * pl.cdiv(B, bt) == 1:
        if B >= 2:
            bt = max(1, B // 2)
            while B % bt:
                bt -= 1
        elif S2 >= 2 * sublane:
            ts = ((S2 // 2 + sublane - 1) // sublane) * sublane
            bt = 1
    return ts, bt


def positional_encoding_forward(x: jnp.ndarray,
                                pe: jnp.ndarray,
                                dropout_p: float,
                                seed: int = 0) -> jnp.ndarray:
    """x: (B, S, E). pe: (max_len, E) f32. Returns (B, S, E) with x's dtype."""
    assert x.ndim == 3, "Expect (batch, sequence, embedding) dims"
    B, S, E = x.shape
    assert pe.shape[0] >= S and pe.shape[1] == E
    assert 0.0 <= float(dropout_p) < 1.0
    assert jnp.issubdtype(x.dtype, jnp.floating)

    # bf16 inputs: keep pe + compute in bf16 (native VALU on v6e/v7x, halves pe bytes).
    compute_dtype = jnp.bfloat16 if x.dtype == jnp.bfloat16 else jnp.float32

    # Lane-dense fold (B,S,E) -> (B, S/k, k*E); row-major reshape preserves the flat index
    # the dropout counter is built from, so semantics are unchanged.
    k = _lane_fold(S, E)
    S2, E2 = S // k, E * k
    x2 = x.reshape(B, S2, E2)
    pe2 = pe[:S, :].astype(compute_dtype).reshape(S2, E2)
    seed_arr = jnp.array([seed], dtype=jnp.int32)

    # Generation-aware VMEM budget (v5e/v6e: 128 MiB physical, v7x: 64 MiB per TensorCore).
    try:
        vmem_cap = int(pltpu.get_tpu_info().vmem_capacity_bytes)
    except Exception:
        vmem_cap = 64 * _MIB
    budget = min(28 * _MIB, (vmem_cap * 3) // 8)

    xsz = jnp.dtype(x.dtype).itemsize
    pesz = jnp.dtype(compute_dtype).itemsize
    ts, bt = _pick_tiles(B, S2, E2, xsz, pesz, budget, float(dropout_p) > 0.0)
    n_s, n_b = pl.cdiv(S2, ts), pl.cdiv(B, bt)

    keep_prob = 1.0 - float(dropout_p)
    if dropout_p == 0.0:
        keep_threshold_24 = 1 << 24              # statically disables the mask path
    else:
        keep_threshold_24 = min((1 << 24) - 1, int(round(keep_prob * (1 << 24))))

    kernel = functools.partial(
        _pe_dropout_kernel,
        keep_threshold_24=keep_threshold_24,
        inv_keep_prob=1.0 / keep_prob,
        bt=bt, ts=ts, s2=S2, e2=E2, compute_dtype=compute_dtype)

    flops_per_elem = 12 if dropout_p > 0.0 else 1
    cost = pl.CostEstimate(
        flops=int(flops_per_elem * B * S * E),
        transcendentals=0,
        bytes_accessed=int(2 * B * S * E * xsz + S * E * pesz))

    out2 = pl.pallas_call(
        kernel,
        out_shape=jax.ShapeDtypeStruct((B, S2, E2), x.dtype),
        grid_spec=pltpu.PrefetchScalarGridSpec(
            num_scalar_prefetch=1,
            # seq-chunk outermost, batch innermost => pe block VMEM-resident across batch.
            grid=(n_s, n_b),
            in_specs=[
                pl.BlockSpec((bt, ts, E2), lambda si, bi, seed: (bi, si, 0)),   # x
                pl.BlockSpec((ts, E2), lambda si, bi, seed: (si, 0)),           # pe
            ],
            out_specs=pl.BlockSpec((bt, ts, E2), lambda si, bi, seed: (bi, si, 0)),
        ),
        compiler_params=pltpu.CompilerParams(
            # Mask stream is a pure function of grid indices => both axes independent;
            # lets v7x shard the grid across its two TensorCores (free on v5e/v6e).
            dimension_semantics=("parallel", "parallel"),
            vmem_limit_bytes=int(min((vmem_cap * 3) // 4, 96 * _MIB)),
        ),
        cost_estimate=cost,
    )(seed_arr, x2, pe2)
    return out2.reshape(B, S, E)


if __name__ == "__main__":
    # Small shapes consistent with (batch, sequence, embedding).
    B, S, E = 2, 8, 32
    MAX_LEN = 16
    DROPOUT_P = 0.1

    key = jax.random.PRNGKey(0)
    x = jax.random.normal(key, (B, S, E), dtype=jnp.float32)
    pe = _make_pe_table(MAX_LEN, E)
    ref = x + pe[None, :S, :]

    # 1) dropout_p = 0.0: exact check of the PE add path.
    out_nodrop = jax.block_until_ready(positional_encoding_forward(x, pe, 0.0, seed=0))
    assert out_nodrop.shape == (B, S, E) and out_nodrop.dtype == x.dtype
    assert bool(jnp.allclose(out_nodrop, ref, atol=1e-5)), "PE add mismatch"

    # 2) dropout_p = 0.1: every element is either 0 (dropped) or (x+pe)/keep_prob (kept).
    out = jax.block_until_ready(positional_encoding_forward(x, pe, DROPOUT_P, seed=0))
    keep_prob = 1.0 - DROPOUT_P
    scaled = ref / keep_prob
    is_drop = jnp.isclose(out, 0.0)
    is_keep = jnp.isclose(out, scaled, atol=1e-5)
    assert bool(jnp.all(is_drop | is_keep)), "dropout/PE-add semantics mismatch"
    kept_frac = float(jnp.mean(is_keep.astype(jnp.float32)))
    assert 0.5 < kept_frac <= 1.0, f"implausible dropout keep rate: {kept_frac}"
    assert out.shape == (B, S, E) and out.dtype == jnp.float32

    print("KERNEL_OK")
</pallas_src>

<mosaic_0001>
module attributes {stable_mosaic.version = 11 : i64} {
  func.func @_pe_dropout_kernel(%arg0: i32, %arg1: i32, %arg2: memref<1xi32, #tpu.memory_space<smem>>, %arg3: memref<1x2x128xf32, #tpu.memory_space<vmem>>, %arg4: memref<2x128xf32, #tpu.memory_space<vmem>>, %arg5: memref<1x2x128xf32, #tpu.memory_space<vmem>>) attributes {dimension_semantics = [#tpu.dimension_semantics<parallel>, #tpu.dimension_semantics<parallel>], iteration_bounds = array<i64: 1, 2>, scalar_prefetch = 1 : i64, scratch_operands = 0 : i64, tpu.core_type = #tpu.core_type<tc>, window_params = [{transform_indices = @transform_0, window_bounds = array<i64: 1, 2, 128>}, {transform_indices = @transform_1, window_bounds = array<i64: 2, 128>}, {transform_indices = @transform_2, window_bounds = array<i64: 1, 2, 128>}]} {
    %c0 = arith.constant 0 : index
    %c0_0 = arith.constant 0 : index
    %c0_1 = arith.constant 0 : index
    %0 = vector.load %arg3[%c0, %c0_0, %c0_1] : memref<1x2x128xf32, #tpu.memory_space<vmem>>, vector<1x2x128xf32>
    %c0_2 = arith.constant 0 : index
    %c0_3 = arith.constant 0 : index
    %1 = vector.load %arg4[%c0_2, %c0_3] : memref<2x128xf32, #tpu.memory_space<vmem>>, vector<2x128xf32>
    %2 = vector.shape_cast %1 : vector<2x128xf32> to vector<1x2x128xf32>
    %3 = arith.addf %0, %2 : vector<1x2x128xf32>
    %c0_4 = arith.constant 0 : index
    %c0_5 = arith.constant 0 : index
    %c0_6 = arith.constant 0 : index
    %4 = vector.load %arg5[%c0_4, %c0_5, %c0_6] : memref<1x2x128xf32, #tpu.memory_space<vmem>>, vector<1x2x128xf32>
    tpu.vector_store %arg5[%c0_4, %c0_5, %c0_6], %3 {strides = array<i32>} : memref<1x2x128xf32, #tpu.memory_space<vmem>>, vector<1x2x128xf32>,
    return
  }
  func.func @transform_0(%arg0: i32, %arg1: i32, %arg2: memref<1xi32, #tpu.memory_space<smem>>) -> (i32, i32, i32) {
    %c0_i32 = arith.constant 0 : i32
    %c0_i32_0 = arith.constant 0 : i32
    return %arg1, %arg0, %c0_i32 : i32, i32, i32
  }
  func.func @transform_1(%arg0: i32, %arg1: i32, %arg2: memref<1xi32, #tpu.memory_space<smem>>) -> (i32, i32) {
    %c0_i32 = arith.constant 0 : i32
    %c0_i32_0 = arith.constant 0 : i32
    return %arg0, %c0_i32 : i32, i32
  }
  func.func @transform_2(%arg0: i32, %arg1: i32, %arg2: memref<1xi32, #tpu.memory_space<smem>>) -> (i32, i32, i32) {
    %c0_i32 = arith.constant 0 : i32
    %c0_i32_0 = arith.constant 0 : i32
    return %arg1, %arg0, %c0_i32 : i32, i32, i32
  }
}

</mosaic_0001>

<bundles_post_ra>
// kernel: tpu_custom_call.1
= control target key start
LH: loop header
LB: loop body
LE: loop exit
PB: predicated region body
PF: predicated region fallthrough
CT: control target
= control target key end

     0   :  { %9 = vsyncpa [#allocation5], 0  ;;  %s646_s0 = inlined_call_operand.<no memory space> [shape: s32[1], index: 0, kind: input, shape index: {}]   ;;  %s647_s1 = inlined_call_operand.hbm [shape: f32[2,2,128], index: 1, kind: input, shape index: {}]   ;;  %s648_s2 = inlined_call_operand.vmem [shape: f32[2,128], index: 2, kind: input, shape index: {}]   ;;  %s649_s3 = inlined_call_operand.hbm [shape: f32[2,2,128], index: 3, kind: output, shape index: {}]  }
   0x1   :  { %11 = vsyncpa [#allocation5 + $0x1], 0 }
   0x2   :  { %12 = vsyncpa [#allocation6], 0 }
   0x3   :  { %14 = vsyncpa [#allocation6 + $0x1], 0  ;;  %s523_s12 = smov 0   ;;  %s525_s13 = smov 0  }
   0x4   :  { %s527_s14 = smov 0   ;;  %s529_s0 = smov 0  }
   0x5   :  { %s531_s15 = smov 0   ;;  %s533_s16 = smov 0  }
   0x6 LB: > { %s313_s17 = sadd.s32 4294967295, %s501_s16   ;;  %s314_s18 = sadd.s32 4294967294, %s501_s16   ;;  %s501_s16 = sphi %s533_s16, %s20_s16   ;;  %s497_s15 = sphi %s531_s15, %s658_s15   ;;  %s493_s0 = sphi %s529_s0, %s657_s0   ;;  %s489_s14 = sphi %s527_s14, %s656_s14   ;;  %s485_s13 = sphi %s525_s13, %s655_s13   ;;  %s481_s12 = sphi %s523_s12, %s654_s12  }
   0x7   : > { %s29_s19 = sadd.s32 1, %s497_s15  ;;  %s41_s20 = sadd.s32 1, %s489_s14 }
   0x8   : > { %p30_p0 = scmp.ge.s32.totalorder %s29_s19, 2  ;;  %p48_p1 = scmp.ne.s32.totalorder %s489_s14, %s485_s13 }
   0x9   : > { %p49_p2 = scmp.eq.s32.totalorder %s501_s16, 0  ;;  %p54_p3 = scmp.ne.s32.totalorder %s485_s13, %s481_s12 }
   0xa   : > { %s660_s19 = smov (%p30_p0, %s29_s19), 0  ;;  %p55_p5 = scmp.eq.s32.totalorder %s313_s17, 0 }
   0xb   : > { %p564_p4 = por %p49_p2, %p48_p1  ;;  %s36_s22 = ssub.s32 %s497_s15, %s660_s19 }
   0xc   : > { %p106_p6 = scmp.eq.s32.totalorder %s313_s17, 1  ;;  %p39_p7 = scmp.eq.s32.totalorder %s36_s22, 0 }
   0xd   : > { %p570_p8 = por %p55_p5, %p54_p3  ;;  %p112_p10 = scmp.eq.s32.totalorder %s314_s18, 1 }
   0xe   : > { %p574_p9 = por %p106_p6, %p48_p1  ;;  %p317_p12 = scmp.ge.s32.totalorder %s501_s16, 2 }
   0xf   : > { %s579_s25 = scalar_select %p39_p7, %s489_s14, %s41_s20  }
  0x10   : > { %p581_p11 = por %p112_p10, %p54_p3  ;;  %p339_p13 = scmp.lt.s32.totalorder %s501_s16, 2 }
  0x11   : > { %s139_s27 = sand.u32 1, %s489_s14   ;;  %s319_s29 = sshll.u32 %s497_s15, 1 }
  0x12   : > { %s318_s28 = sshll.u32 %s139_s27, 1  ;;  %s148_s5 = scalar_lea.hbm %s647_s1, %s319_s29 }
  0x13   : > { %s143_s6 = scalar_lea.vmem [#allocation4], %s318_s28  ;;  %s150_s8 = sshll.u32 %s148_s5, 4  ;;  %s151_s8 = int_to_ptr.hbm [resolvable:$true] %s150_s8 }
  0x14   : > { %s152_s7 = sshll.u32 %s143_s6, 4  ;;  %p332_p0 = pnand %p339_p13, %p564_p4  ;;  %s153_s7 = int_to_ptr.vmem [resolvable:$true] %s152_s7 }
  0x15   : > { %p320_p1 = scmp.ge.s32.totalorder %s501_s16, 1  ;;  %p157_p2 = scmp.lt.s32.totalorder %s501_s16, 3 }
  0x16   : > { %s140_s9 = scalar_lea.sflag [#allocation5], %s139_s27 }
  0x17   : > { %334 = dma.hbm_to_vmem [thread:$0]  (!%p332_p0), %s151_s8, 32, %s153_s7, %s140_s9  }
  0x18   : > { %p158_p3 = pnand %p320_p1, %p157_p2 }
  0x19   : > { %s597_s10 = sand.u32 (!%p158_p3), 1, %s485_s13  }
  0x1a   : > { %161 = sbr.rel (%p158_p3) target bundleno = 47 (0x2f), region = 28  ;;  %s321_s11 = sshll.u32 (!%p158_p3), %s597_s10, 1 }
  0x1b   : > { %s164_s17 = scalar_lea.sflag (!%p158_p3), [#allocation5], %s597_s10  ;;  %s167_s18 = scalar_lea.vmem (!%p158_p3), [#allocation4], %s321_s11 }
  0x1f   : > { %472 = dma.done.wait (%p570_p8), %s164_s17, 32  }
  0x20   : > { %474 = vsyncadd (%p570_p8), %s164_s17, 4294967264  ;;  %s324_s20 = sshll.u32 %s493_s0, 1  ;;  %s192_s28 = scalar_lea.vmem [#allocation7], %s321_s11  ;;  %v197_v0 = vld [vmem:[%s167_s18] sm:$0x3] }
  0x21   : > { %s213_s27 = scalar_lea.hbm %s649_s3, %s324_s20  ;;  %s215_s29 = sshll.u32 %s192_s28, 4  ;;  %v198_v1 = vld [vmem:[%s648_s2] sm:$0x3]  ;;  %s216_s29 = int_to_ptr.vmem [resolvable:$true] %s215_s29 }
  0x22   : > { %s217_s30 = sshll.u32 %s213_s27, 4  ;;  %v199_v2 = vadd.f32 %v198_v1, %v197_v0  ;;  %s202_s23 = scalar_lea.sflag [#allocation6], %s597_s10  ;;  %s218_s30 = int_to_ptr.hbm [resolvable:$true] %s217_s30 }
  0x23   : > { %s433_s6 = sshra.s32 %s218_s30, 4  ;;  %s439_s9 = scalar_lea.hbm %s649_s3, 4  ;;  %s434_s6 = int_to_ptr.hbm [resolvable:$true] %s433_s6 }
  0x24   : > { %200 = vst [vmem:[%s192_s28] sm:$0x3] %v199_v2  ;;  %s435_s0 = scalar_lea.hbm %s434_s6, 2  ;;  %p440_p7 = scmp.lt.s32.totalorder %s434_s6, %s649_s3 }
  0x25   : > { %p436_p4 = scmp.ne.s32.totalorder %s434_s6, %s435_s0  ;;  %p441_p8 = scmp.lt.s32.totalorder %s439_s9, %s435_s0 }
  0x27   : > { %p437_p5 = pnand %p436_p4, %p574_p9  ;;  %p442_p10 = por %p441_p8, %p440_p7 }
  0x29   : > { %p438_p6 = pneg %p437_p5 }
  0x2b   : > { %p443_p13 = pnand %p442_p10, %p438_p6 }
  0x2d   : > { %446 = shalt.err (!%p443_p13)
}
  0x2e   : > { %329 = dma.vmem_to_hbm [thread:$0]  (%p574_p9), %s216_s29, 32, %s218_s30, %s202_s23  }
  0x2f PF: > { %s229_s10 = sand.u32 1, %s481_s12   ;;  %p336_p0 = pnand %p317_p12, %p581_p11 }
  0x30   : > { %s230_s18 = scalar_lea.sflag [#allocation6], %s229_s10 }
  0x31   : > { %p337_p1 = pneg %p336_p0 }
  0x33   : > { %476 = dma.done.wait (%p337_p1), %s230_s18, 32  }
  0x34   : > { %478 = vsyncadd (%p337_p1), %s230_s18, 4294967264  ;;  %s20_s16 = sadd.s32 1, %s501_s16   ;;  %s654_s12 = smov %s485_s13 }
  0x35   : > { %p17_p2 = scmp.ge.s32.totalorder %s20_s16, 4   ;;  %s655_s13 = smov %s489_s14 }
  0x36   : > { %s656_s14 = smov %s579_s25  ;;  %s657_s0 = smov %s497_s15 }
  0x37   : > { %s658_s15 = smov %s660_s19  ;;  %19 = sbr.rel (!%p17_p2) target bundleno = 6 (0x6), region = 76 }
  0x3c   :  { %236 = vsyncpa [#allocation5], 1 }
  0x3d   :  { %238 = vsyncpa [#allocation5 + $0x1], 1 }
  0x3e   :  { %239 = vsyncpa [#allocation6], 1 }
  0x3f   :  { %241 = vsyncpa [#allocation6 + $0x1], 1 }

</bundles_post_ra>
